<compile_context>
chip_gen: v5e
topology: v5e:2x2
jax: 0.10.0
libtpu: 0.0.40
codegen_flags: <defaults>
</compile_context>

<pallas_src>
import jax
import jax.numpy as jnp
from jax.experimental import pallas as pl
from jax.experimental.pallas import tpu as pltpu

# Model / problem sizes (small, consistent with the module's constructor).
RNN_TYPE = "LSTM"
NTOKEN = 16       # vocab size
NINP = 32         # embedding dim
NHID = 32         # hidden dim
B = 2             # batch
T = 8             # sequence length
NTOKEN_PAD = 128  # lane-dense padded logits width (sliced back to NTOKEN outside)


def lstm_decoder_kernel(emb_ref, wih_ref, whh_ref, b_ref, wdec_ref, bdec_ref,
                        dec_ref, hout_ref, cout_ref, hs_scr):
    """Whole-sequence LSTM recurrence + decoder, single kernel invocation.

    emb_ref : (T*B, NINP)        time-major flattened embeddings
    wih_ref : (NINP, 4*NHID)     input->gates weights (pre-transposed)
    whh_ref : (NHID, 4*NHID)     hidden->gates weights (pre-transposed)
    b_ref   : (1, 4*NHID)        b_ih + b_hh
    wdec_ref: (NHID, NTOKEN_PAD) decoder weights (pre-transposed, lane-padded)
    bdec_ref: (1, NTOKEN_PAD)    decoder bias (lane-padded)
    dec_ref : (B, T, NTOKEN_PAD) batch-first padded logits
    hout_ref, cout_ref: (B, NHID) final hidden / cell state
    hs_scr  : (B, T, NHID)       VMEM scratch collecting per-step hidden states
    """
    H = NHID

    # Hoisted input projection: one (T*B, NINP) @ (NINP, 4H) matmul + bias,
    # entirely off the serial recurrence chain.  PyTorch gate order: i, f, g, o.
    gx = (jnp.dot(emb_ref[...], wih_ref[...],
                  preferred_element_type=jnp.float32) + b_ref[...])   # (T*B, 4H)
    whh = whh_ref[...]

    h = jnp.zeros((B, H), jnp.float32)
    c = jnp.zeros((B, H), jnp.float32)

    # T is a small compile-time constant: fully unrolled recurrence.  Only the
    # h_prev @ Whh matmul and the elementwise gate math sit on the serial chain.
    for t in range(T):
        gates = gx[t * B:(t + 1) * B, :] + jnp.dot(
            h, whh, preferred_element_type=jnp.float32)               # (B, 4H)
        i = jax.nn.sigmoid(gates[:, 0 * H:1 * H])
        f = jax.nn.sigmoid(gates[:, 1 * H:2 * H])
        g = jnp.tanh(gates[:, 2 * H:3 * H])
        o = jax.nn.sigmoid(gates[:, 3 * H:4 * H])
        c = f * c + i * g
        h = o * jnp.tanh(c)
        hs_scr[:, t, :] = h

    # Final hidden state outputs, written exactly once.
    hout_ref[...] = h
    cout_ref[...] = c

    # Batched decoder, off the recurrent critical path: one
    # (T, NHID) @ (NHID, NTOKEN_PAD) matmul per batch row, emitted batch-first
    # into a lane-dense (…, 128) output slab.
    wdec = wdec_ref[...]
    bdec = bdec_ref[...]
    for bi in range(B):
        dec_ref[bi] = (jnp.dot(hs_scr[bi], wdec,
                               preferred_element_type=jnp.float32) + bdec)


@jax.jit
def rnn_model_forward(params, tokens, hidden=None):
    """Pallas-backed equivalent of RNNModel.forward (LSTM, eval mode).

    tokens: (B, T) int32.  `hidden` is accepted for signature parity but
    ignored, exactly like the PyTorch forward (it calls self.rnn(emb)).
    Returns (decoded (B, T, NTOKEN), (h_n (1, B, NHID), c_n (1, B, NHID))).
    """
    del hidden
    # --- glue (plain JAX): embedding gather with the time-major transpose
    #     fused into the gather index (tokens.T), plus weight layout prep -----
    emb_tm = params["emb"][tokens.T]                        # (T, B, NINP)
    emb_flat = emb_tm.reshape(T * B, NINP)                  # time-major rows
    wih_t = params["wih"].T                                 # (NINP, 4H)
    whh_t = params["whh"].T                                 # (NHID, 4H)
    bias = (params["bih"] + params["bhh"])[None, :]         # (1, 4H)
    wdec_pad = jnp.zeros((NHID, NTOKEN_PAD), jnp.float32)
    wdec_pad = wdec_pad.at[:, :NTOKEN].set(params["wdec"].T)
    bdec_pad = jnp.zeros((1, NTOKEN_PAD), jnp.float32)
    bdec_pad = bdec_pad.at[:, :NTOKEN].set(params["bdec"])

    vmem = pl.BlockSpec(memory_space=pltpu.MemorySpace.VMEM)

    # --- hot path: whole LSTM recurrence + decoder in one Pallas call --------
    dec_pad, h_n, c_n = pl.pallas_call(
        lstm_decoder_kernel,
        out_shape=(
            jax.ShapeDtypeStruct((B, T, NTOKEN_PAD), jnp.float32),
            jax.ShapeDtypeStruct((B, NHID), jnp.float32),
            jax.ShapeDtypeStruct((B, NHID), jnp.float32),
        ),
        in_specs=[vmem] * 6,
        out_specs=(vmem, vmem, vmem),
        scratch_shapes=[pltpu.VMEM((B, T, NHID), jnp.float32)],
    )(emb_flat, wih_t, whh_t, bias, wdec_pad, bdec_pad)

    decoded = dec_pad[:, :, :NTOKEN]                        # (B, T, NTOKEN)
    return decoded, (h_n[None], c_n[None])                  # PyTorch (1,B,NHID) each


def init_params(key):
    """Deterministic parameter init matching the module's shapes/init rules."""
    k_emb, k_wih, k_whh, k_bih, k_bhh, k_dec = jax.random.split(key, 6)
    s = 1.0 / jnp.sqrt(jnp.float32(NHID))
    emb = jax.random.normal(k_emb, (NTOKEN, NINP), jnp.float32)
    emb = emb.at[0].set(0.0)                                # padding_idx=0
    params = {
        "emb": emb,
        "wih": jax.random.uniform(k_wih, (4 * NHID, NINP), jnp.float32, -s, s),
        "whh": jax.random.uniform(k_whh, (4 * NHID, NHID), jnp.float32, -s, s),
        "bih": jax.random.uniform(k_bih, (4 * NHID,), jnp.float32, -s, s),
        "bhh": jax.random.uniform(k_bhh, (4 * NHID,), jnp.float32, -s, s),
        "wdec": jax.random.uniform(k_dec, (NTOKEN, NHID), jnp.float32, -s, s),
        "bdec": jnp.zeros((NTOKEN,), jnp.float32),          # bias.data.zero_()
    }
    return params


def reference_forward(params, tokens):
    """Pure-JAX reference (lax.scan) for correctness checking."""
    emb = params["emb"][tokens]                             # (B, T, NINP)
    x_tm = jnp.transpose(emb, (1, 0, 2))                    # (T, B, NINP)
    h0 = jnp.zeros((B, NHID), jnp.float32)
    c0 = jnp.zeros((B, NHID), jnp.float32)

    def step(carry, x_t):
        h, c = carry
        gates = (x_t @ params["wih"].T + h @ params["whh"].T
                 + params["bih"] + params["bhh"])
        i = jax.nn.sigmoid(gates[:, 0 * NHID:1 * NHID])
        f = jax.nn.sigmoid(gates[:, 1 * NHID:2 * NHID])
        g = jnp.tanh(gates[:, 2 * NHID:3 * NHID])
        o = jax.nn.sigmoid(gates[:, 3 * NHID:4 * NHID])
        c = f * c + i * g
        h = o * jnp.tanh(c)
        return (h, c), h

    (h_n, c_n), hs = jax.lax.scan(step, (h0, c0), x_tm)
    out = jnp.transpose(hs, (1, 0, 2))                      # (B, T, NHID)
    decoded = out @ params["wdec"].T + params["bdec"]
    return decoded, (h_n[None], c_n[None])


if __name__ == "__main__":
    key = jax.random.PRNGKey(0)
    k_params, k_tok = jax.random.split(key)
    params = init_params(k_params)
    # Token ids in [0, NTOKEN); id 0 == padding.
    tokens = jax.random.randint(k_tok, (B, T), 0, NTOKEN, dtype=jnp.int32)
    init_hidden = (jnp.zeros((1, 1, NHID), jnp.float32),
                   jnp.zeros((1, 1, NHID), jnp.float32))

    decoded, (h_n, c_n) = rnn_model_forward(params, tokens, init_hidden)
    jax.block_until_ready((decoded, h_n, c_n))

    # Sanity check against pure-JAX reference.
    ref_dec, (ref_h, ref_c) = reference_forward(params, tokens)
    assert decoded.shape == (B, T, NTOKEN)
    assert h_n.shape == (1, B, NHID) and c_n.shape == (1, B, NHID)
    assert jnp.allclose(decoded, ref_dec, rtol=1e-3, atol=1e-3)
    assert jnp.allclose(h_n, ref_h, rtol=1e-3, atol=1e-3)
    assert jnp.allclose(c_n, ref_c, rtol=1e-3, atol=1e-3)

    # TODO(synk): training-mode nn.Dropout (p=0.5) RNG is not reproduced; eval-mode
    # (identity) semantics are implemented, matching PyTorch inference.
    print("KERNEL_OK")
</pallas_src>

<mosaic_0001>
module attributes {stable_mosaic.version = 11 : i64} {
  func.func @lstm_decoder_kernel(%arg0: memref<16x32xf32, #tpu.memory_space<vmem>>, %arg1: memref<32x128xf32, #tpu.memory_space<vmem>>, %arg2: memref<32x128xf32, #tpu.memory_space<vmem>>, %arg3: memref<1x128xf32, #tpu.memory_space<vmem>>, %arg4: memref<32x128xf32, #tpu.memory_space<vmem>>, %arg5: memref<1x128xf32, #tpu.memory_space<vmem>>, %arg6: memref<2x8x128xf32, #tpu.memory_space<vmem>>, %arg7: memref<2x32xf32, #tpu.memory_space<vmem>>, %arg8: memref<2x32xf32, #tpu.memory_space<vmem>>, %arg9: memref<2x8x32xf32, #tpu.memory_space<vmem>>) attributes {dimension_semantics = [], scalar_prefetch = 0 : i64, scratch_operands = 1 : i64, tpu.core_type = #tpu.core_type<tc>} {
    %c0 = arith.constant 0 : index
    %c0_0 = arith.constant 0 : index
    %0 = vector.load %arg0[%c0, %c0_0] : memref<16x32xf32, #tpu.memory_space<vmem>>, vector<16x32xf32>
    %c0_1 = arith.constant 0 : index
    %c0_2 = arith.constant 0 : index
    %1 = vector.load %arg1[%c0_1, %c0_2] : memref<32x128xf32, #tpu.memory_space<vmem>>, vector<32x128xf32>
    %cst = arith.constant dense<0.000000e+00> : vector<16x128xf32>
    %2 = tpu.matmul %0, %1, %cst {dimension_numbers = #tpu.dot_dimension_numbers<[1], [0], [0], [1], [0, 0, 1, 1], [], []>} : vector<16x32xf32>, vector<32x128xf32>, vector<16x128xf32> -> vector<16x128xf32>
    %c0_3 = arith.constant 0 : index
    %c0_4 = arith.constant 0 : index
    %3 = vector.load %arg3[%c0_3, %c0_4] : memref<1x128xf32, #tpu.memory_space<vmem>>, vector<1x128xf32>
    %4 = vector.broadcast %3 : vector<1x128xf32> to vector<16x128xf32>
    %5 = arith.addf %2, %4 : vector<16x128xf32>
    %c0_5 = arith.constant 0 : index
    %c0_6 = arith.constant 0 : index
    %6 = vector.load %arg2[%c0_5, %c0_6] : memref<32x128xf32, #tpu.memory_space<vmem>>, vector<32x128xf32>
    %cst_7 = arith.constant 0.000000e+00 : f32
    %7 = vector.broadcast %cst_7 : f32 to vector<2x32xf32>
    %cst_8 = arith.constant 0.000000e+00 : f32
    %8 = vector.broadcast %cst_8 : f32 to vector<2x32xf32>
    %9 = vector.extract_strided_slice %5 {offsets = [0, 0], sizes = [2, 128], strides = [1, 1]} : vector<16x128xf32> to vector<2x128xf32>
    %cst_9 = arith.constant dense<0.000000e+00> : vector<2x128xf32>
    %10 = tpu.matmul %7, %6, %cst_9 {dimension_numbers = #tpu.dot_dimension_numbers<[1], [0], [0], [1], [0, 0, 1, 1], [], []>} : vector<2x32xf32>, vector<32x128xf32>, vector<2x128xf32> -> vector<2x128xf32>
    %11 = arith.addf %9, %10 : vector<2x128xf32>
    %12 = vector.extract_strided_slice %11 {offsets = [0, 0], sizes = [2, 32], strides = [1, 1]} : vector<2x128xf32> to vector<2x32xf32>
    %13 = arith.negf %12 : vector<2x32xf32>
    %14 = math.exp %13 : vector<2x32xf32>
    %cst_10 = arith.constant 1.000000e+00 : f32
    %15 = vector.broadcast %cst_10 : f32 to vector<2x32xf32>
    %16 = arith.addf %15, %14 : vector<2x32xf32>
    %17 = arith.divf %15, %16 : vector<2x32xf32>
    %18 = vector.extract_strided_slice %11 {offsets = [0, 32], sizes = [2, 32], strides = [1, 1]} : vector<2x128xf32> to vector<2x32xf32>
    %19 = arith.negf %18 : vector<2x32xf32>
    %20 = math.exp %19 : vector<2x32xf32>
    %cst_11 = arith.constant 1.000000e+00 : f32
    %21 = vector.broadcast %cst_11 : f32 to vector<2x32xf32>
    %22 = arith.addf %21, %20 : vector<2x32xf32>
    %23 = arith.divf %21, %22 : vector<2x32xf32>
    %24 = vector.extract_strided_slice %11 {offsets = [0, 64], sizes = [2, 32], strides = [1, 1]} : vector<2x128xf32> to vector<2x32xf32>
    %25 = math.tanh %24 : vector<2x32xf32>
    %26 = vector.extract_strided_slice %11 {offsets = [0, 96], sizes = [2, 32], strides = [1, 1]} : vector<2x128xf32> to vector<2x32xf32>
    %27 = arith.negf %26 : vector<2x32xf32>
    %28 = math.exp %27 : vector<2x32xf32>
    %cst_12 = arith.constant 1.000000e+00 : f32
    %29 = vector.broadcast %cst_12 : f32 to vector<2x32xf32>
    %30 = arith.addf %29, %28 : vector<2x32xf32>
    %31 = arith.divf %29, %30 : vector<2x32xf32>
    %32 = arith.mulf %23, %8 : vector<2x32xf32>
    %33 = arith.mulf %17, %25 : vector<2x32xf32>
    %34 = arith.addf %32, %33 : vector<2x32xf32>
    %35 = math.tanh %34 : vector<2x32xf32>
    %36 = arith.mulf %31, %35 : vector<2x32xf32>
    %c0_13 = arith.constant 0 : index
    %c0_14 = arith.constant 0 : index
    %c0_15 = arith.constant 0 : index
    %37 = vector.load %arg9[%c0_13, %c0_14, %c0_15] : memref<2x8x32xf32, #tpu.memory_space<vmem>>, vector<2x1x32xf32>
    %38 = vector.shape_cast %37 : vector<2x1x32xf32> to vector<2x32xf32>
    %39 = vector.shape_cast %36 : vector<2x32xf32> to vector<2x1x32xf32>
    tpu.vector_store %arg9[%c0_13, %c0_14, %c0_15], %39 {strides = array<i32>} : memref<2x8x32xf32, #tpu.memory_space<vmem>>, vector<2x1x32xf32>,
    %40 = vector.extract_strided_slice %5 {offsets = [2, 0], sizes = [2, 128], strides = [1, 1]} : vector<16x128xf32> to vector<2x128xf32>
    %cst_16 = arith.constant dense<0.000000e+00> : vector<2x128xf32>
    %41 = tpu.matmul %36, %6, %cst_16 {dimension_numbers = #tpu.dot_dimension_numbers<[1], [0], [0], [1], [0, 0, 1, 1], [], []>} : vector<2x32xf32>, vector<32x128xf32>, vector<2x128xf32> -> vector<2x128xf32>
    %42 = arith.addf %40, %41 : vector<2x128xf32>
    %43 = vector.extract_strided_slice %42 {offsets = [0, 0], sizes = [2, 32], strides = [1, 1]} : vector<2x128xf32> to vector<2x32xf32>
    %44 = arith.negf %43 : vector<2x32xf32>
    %45 = math.exp %44 : vector<2x32xf32>
    %cst_17 = arith.constant 1.000000e+00 : f32
    %46 = vector.broadcast %cst_17 : f32 to vector<2x32xf32>
    %47 = arith.addf %46, %45 : vector<2x32xf32>
    %48 = arith.divf %46, %47 : vector<2x32xf32>
    %49 = vector.extract_strided_slice %42 {offsets = [0, 32], sizes = [2, 32], strides = [1, 1]} : vector<2x128xf32> to vector<2x32xf32>
    %50 = arith.negf %49 : vector<2x32xf32>
    %51 = math.exp %50 : vector<2x32xf32>
    %cst_18 = arith.constant 1.000000e+00 : f32
    %52 = vector.broadcast %cst_18 : f32 to vector<2x32xf32>
    %53 = arith.addf %52, %51 : vector<2x32xf32>
    %54 = arith.divf %52, %53 : vector<2x32xf32>
    %55 = vector.extract_strided_slice %42 {offsets = [0, 64], sizes = [2, 32], strides = [1, 1]} : vector<2x128xf32> to vector<2x32xf32>
    %56 = math.tanh %55 : vector<2x32xf32>
    %57 = vector.extract_strided_slice %42 {offsets = [0, 96], sizes = [2, 32], strides = [1, 1]} : vector<2x128xf32> to vector<2x32xf32>
    %58 = arith.negf %57 : vector<2x32xf32>
    %59 = math.exp %58 : vector<2x32xf32>
    %cst_19 = arith.constant 1.000000e+00 : f32
    %60 = vector.broadcast %cst_19 : f32 to vector<2x32xf32>
    %61 = arith.addf %60, %59 : vector<2x32xf32>
    %62 = arith.divf %60, %61 : vector<2x32xf32>
    %63 = arith.mulf %54, %34 : vector<2x32xf32>
    %64 = arith.mulf %48, %56 : vector<2x32xf32>
    %65 = arith.addf %63, %64 : vector<2x32xf32>
    %66 = math.tanh %65 : vector<2x32xf32>
    %67 = arith.mulf %62, %66 : vector<2x32xf32>
    %c0_20 = arith.constant 0 : index
    %c1 = arith.constant 1 : index
    %c0_21 = arith.constant 0 : index
    %68 = vector.load %arg9[%c0_20, %c1, %c0_21] : memref<2x8x32xf32, #tpu.memory_space<vmem>>, vector<2x1x32xf32>
    %69 = vector.shape_cast %68 : vector<2x1x32xf32> to vector<2x32xf32>
    %70 = vector.shape_cast %67 : vector<2x32xf32> to vector<2x1x32xf32>
    tpu.vector_store %arg9[%c0_20, %c1, %c0_21], %70 {strides = array<i32>} : memref<2x8x32xf32, #tpu.memory_space<vmem>>, vector<2x1x32xf32>,
    %71 = vector.extract_strided_slice %5 {offsets = [4, 0], sizes = [2, 128], strides = [1, 1]} : vector<16x128xf32> to vector<2x128xf32>
    %cst_22 = arith.constant dense<0.000000e+00> : vector<2x128xf32>
    %72 = tpu.matmul %67, %6, %cst_22 {dimension_numbers = #tpu.dot_dimension_numbers<[1], [0], [0], [1], [0, 0, 1, 1], [], []>} : vector<2x32xf32>, vector<32x128xf32>, vector<2x128xf32> -> vector<2x128xf32>
    %73 = arith.addf %71, %72 : vector<2x128xf32>
    %74 = vector.extract_strided_slice %73 {offsets = [0, 0], sizes = [2, 32], strides = [1, 1]} : vector<2x128xf32> to vector<2x32xf32>
    %75 = arith.negf %74 : vector<2x32xf32>
    %76 = math.exp %75 : vector<2x32xf32>
    %cst_23 = arith.constant 1.000000e+00 : f32
    %77 = vector.broadcast %cst_23 : f32 to vector<2x32xf32>
    %78 = arith.addf %77, %76 : vector<2x32xf32>
    %79 = arith.divf %77, %78 : vector<2x32xf32>
    %80 = vector.extract_strided_slice %73 {offsets = [0, 32], sizes = [2, 32], strides = [1, 1]} : vector<2x128xf32> to vector<2x32xf32>
    %81 = arith.negf %80 : vector<2x32xf32>
    %82 = math.exp %81 : vector<2x32xf32>
    %cst_24 = arith.constant 1.000000e+00 : f32
    %83 = vector.broadcast %cst_24 : f32 to vector<2x32xf32>
    %84 = arith.addf %83, %82 : vector<2x32xf32>
    %85 = arith.divf %83, %84 : vector<2x32xf32>
    %86 = vector.extract_strided_slice %73 {offsets = [0, 64], sizes = [2, 32], strides = [1, 1]} : vector<2x128xf32> to vector<2x32xf32>
    %87 = math.tanh %86 : vector<2x32xf32>
    %88 = vector.extract_strided_slice %73 {offsets = [0, 96], sizes = [2, 32], strides = [1, 1]} : vector<2x128xf32> to vector<2x32xf32>
    %89 = arith.negf %88 : vector<2x32xf32>
    %90 = math.exp %89 : vector<2x32xf32>
    %cst_25 = arith.constant 1.000000e+00 : f32
    %91 = vector.broadcast %cst_25 : f32 to vector<2x32xf32>
    %92 = arith.addf %91, %90 : vector<2x32xf32>
    %93 = arith.divf %91, %92 : vector<2x32xf32>
    %94 = arith.mulf %85, %65 : vector<2x32xf32>
    %95 = arith.mulf %79, %87 : vector<2x32xf32>
    %96 = arith.addf %94, %95 : vector<2x32xf32>
    %97 = math.tanh %96 : vector<2x32xf32>
    %98 = arith.mulf %93, %97 : vector<2x32xf32>
    %c0_26 = arith.constant 0 : index
    %c2 = arith.constant 2 : index
    %c0_27 = arith.constant 0 : index
    %99 = vector.load %arg9[%c0_26, %c2, %c0_27] : memref<2x8x32xf32, #tpu.memory_space<vmem>>, vector<2x1x32xf32>
    %100 = vector.shape_cast %99 : vector<2x1x32xf32> to vector<2x32xf32>
    %101 = vector.shape_cast %98 : vector<2x32xf32> to vector<2x1x32xf32>
    tpu.vector_store %arg9[%c0_26, %c2, %c0_27], %101 {strides = array<i32>} : memref<2x8x32xf32, #tpu.memory_space<vmem>>, vector<2x1x32xf32>,
    %102 = vector.extract_strided_slice %5 {offsets = [6, 0], sizes = [2, 128], strides = [1, 1]} : vector<16x128xf32> to vector<2x128xf32>
    %cst_28 = arith.constant dense<0.000000e+00> : vector<2x128xf32>
    %103 = tpu.matmul %98, %6, %cst_28 {dimension_numbers = #tpu.dot_dimension_numbers<[1], [0], [0], [1], [0, 0, 1, 1], [], []>} : vector<2x32xf32>, vector<32x128xf32>, vector<2x128xf32> -> vector<2x128xf32>
    %104 = arith.addf %102, %103 : vector<2x128xf32>
    %105 = vector.extract_strided_slice %104 {offsets = [0, 0], sizes = [2, 32], strides = [1, 1]} : vector<2x128xf32> to vector<2x32xf32>
    %106 = arith.negf %105 : vector<2x32xf32>
    %107 = math.exp %106 : vector<2x32xf32>
    %cst_29 = arith.constant 1.000000e+00 : f32
    %108 = vector.broadcast %cst_29 : f32 to vector<2x32xf32>
    %109 = arith.addf %108, %107 : vector<2x32xf32>
    %110 = arith.divf %108, %109 : vector<2x32xf32>
    %111 = vector.extract_strided_slice %104 {offsets = [0, 32], sizes = [2, 32], strides = [1, 1]} : vector<2x128xf32> to vector<2x32xf32>
    %112 = arith.negf %111 : vector<2x32xf32>
    %113 = math.exp %112 : vector<2x32xf32>
    %cst_30 = arith.constant 1.000000e+00 : f32
    %114 = vector.broadcast %cst_30 : f32 to vector<2x32xf32>
    %115 = arith.addf %114, %113 : vector<2x32xf32>
    %116 = arith.divf %114, %115 : vector<2x32xf32>
    %117 = vector.extract_strided_slice %104 {offsets = [0, 64], sizes = [2, 32], strides = [1, 1]} : vector<2x128xf32> to vector<2x32xf32>
    %118 = math.tanh %117 : vector<2x32xf32>
    %119 = vector.extract_strided_slice %104 {offsets = [0, 96], sizes = [2, 32], strides = [1, 1]} : vector<2x128xf32> to vector<2x32xf32>
    %120 = arith.negf %119 : vector<2x32xf32>
    %121 = math.exp %120 : vector<2x32xf32>
    %cst_31 = arith.constant 1.000000e+00 : f32
    %122 = vector.broadcast %cst_31 : f32 to vector<2x32xf32>
    %123 = arith.addf %122, %121 : vector<2x32xf32>
    %124 = arith.divf %122, %123 : vector<2x32xf32>
    %125 = arith.mulf %116, %96 : vector<2x32xf32>
    %126 = arith.mulf %110, %118 : vector<2x32xf32>
    %127 = arith.addf %125, %126 : vector<2x32xf32>
    %128 = math.tanh %127 : vector<2x32xf32>
    %129 = arith.mulf %124, %128 : vector<2x32xf32>
    %c0_32 = arith.constant 0 : index
    %c3 = arith.constant 3 : index
    %c0_33 = arith.constant 0 : index
    %130 = vector.load %arg9[%c0_32, %c3, %c0_33] : memref<2x8x32xf32, #tpu.memory_space<vmem>>, vector<2x1x32xf32>
    %131 = vector.shape_cast %130 : vector<2x1x32xf32> to vector<2x32xf32>
    %132 = vector.shape_cast %129 : vector<2x32xf32> to vector<2x1x32xf32>
    tpu.vector_store %arg9[%c0_32, %c3, %c0_33], %132 {strides = array<i32>} : memref<2x8x32xf32, #tpu.memory_space<vmem>>, vector<2x1x32xf32>,
    %133 = vector.extract_strided_slice %5 {offsets = [8, 0], sizes = [2, 128], strides = [1, 1]} : vector<16x128xf32> to vector<2x128xf32>
    %cst_34 = arith.constant dense<0.000000e+00> : vector<2x128xf32>
    %134 = tpu.matmul %129, %6, %cst_34 {dimension_numbers = #tpu.dot_dimension_numbers<[1], [0], [0], [1], [0, 0, 1, 1], [], []>} : vector<2x32xf32>, vector<32x128xf32>, vector<2x128xf32> -> vector<2x128xf32>
    %135 = arith.addf %133, %134 : vector<2x128xf32>
    %136 = vector.extract_strided_slice %135 {offsets = [0, 0], sizes = [2, 32], strides = [1, 1]} : vector<2x128xf32> to vector<2x32xf32>
    %137 = arith.negf %136 : vector<2x32xf32>
    %138 = math.exp %137 : vector<2x32xf32>
    %cst_35 = arith.constant 1.000000e+00 : f32
    %139 = vector.broadcast %cst_35 : f32 to vector<2x32xf32>
    %140 = arith.addf %139, %138 : vector<2x32xf32>
    %141 = arith.divf %139, %140 : vector<2x32xf32>
    %142 = vector.extract_strided_slice %135 {offsets = [0, 32], sizes = [2, 32], strides = [1, 1]} : vector<2x128xf32> to vector<2x32xf32>
    %143 = arith.negf %142 : vector<2x32xf32>
    %144 = math.exp %143 : vector<2x32xf32>
    %cst_36 = arith.constant 1.000000e+00 : f32
    %145 = vector.broadcast %cst_36 : f32 to vector<2x32xf32>
    %146 = arith.addf %145, %144 : vector<2x32xf32>
    %147 = arith.divf %145, %146 : vector<2x32xf32>
    %148 = vector.extract_strided_slice %135 {offsets = [0, 64], sizes = [2, 32], strides = [1, 1]} : vector<2x128xf32> to vector<2x32xf32>
    %149 = math.tanh %148 : vector<2x32xf32>
    %150 = vector.extract_strided_slice %135 {offsets = [0, 96], sizes = [2, 32], strides = [1, 1]} : vector<2x128xf32> to vector<2x32xf32>
    %151 = arith.negf %150 : vector<2x32xf32>
    %152 = math.exp %151 : vector<2x32xf32>
    %cst_37 = arith.constant 1.000000e+00 : f32
    %153 = vector.broadcast %cst_37 : f32 to vector<2x32xf32>
    %154 = arith.addf %153, %152 : vector<2x32xf32>
    %155 = arith.divf %153, %154 : vector<2x32xf32>
    %156 = arith.mulf %147, %127 : vector<2x32xf32>
    %157 = arith.mulf %141, %149 : vector<2x32xf32>
    %158 = arith.addf %156, %157 : vector<2x32xf32>
    %159 = math.tanh %158 : vector<2x32xf32>
    %160 = arith.mulf %155, %159 : vector<2x32xf32>
    %c0_38 = arith.constant 0 : index
    %c4 = arith.constant 4 : index
    %c0_39 = arith.constant 0 : index
    %161 = vector.load %arg9[%c0_38, %c4, %c0_39] : memref<2x8x32xf32, #tpu.memory_space<vmem>>, vector<2x1x32xf32>
    %162 = vector.shape_cast %161 : vector<2x1x32xf32> to vector<2x32xf32>
    %163 = vector.shape_cast %160 : vector<2x32xf32> to vector<2x1x32xf32>
    tpu.vector_store %arg9[%c0_38, %c4, %c0_39], %163 {strides = array<i32>} : memref<2x8x32xf32, #tpu.memory_space<vmem>>, vector<2x1x32xf32>,
    %164 = vector.extract_strided_slice %5 {offsets = [10, 0], sizes = [2, 128], strides = [1, 1]} : vector<16x128xf32> to vector<2x128xf32>
    %cst_40 = arith.constant dense<0.000000e+00> : vector<2x128xf32>
    %165 = tpu.matmul %160, %6, %cst_40 {dimension_numbers = #tpu.dot_dimension_numbers<[1], [0], [0], [1], [0, 0, 1, 1], [], []>} : vector<2x32xf32>, vector<32x128xf32>, vector<2x128xf32> -> vector<2x128xf32>
    %166 = arith.addf %164, %165 : vector<2x128xf32>
    %167 = vector.extract_strided_slice %166 {offsets = [0, 0], sizes = [2, 32], strides = [1, 1]} : vector<2x128xf32> to vector<2x32xf32>
    %168 = arith.negf %167 : vector<2x32xf32>
    %169 = math.exp %168 : vector<2x32xf32>
    %cst_41 = arith.constant 1.000000e+00 : f32
    %170 = vector.broadcast %cst_41 : f32 to vector<2x32xf32>
    %171 = arith.addf %170, %169 : vector<2x32xf32>
    %172 = arith.divf %170, %171 : vector<2x32xf32>
    %173 = vector.extract_strided_slice %166 {offsets = [0, 32], sizes = [2, 32], strides = [1, 1]} : vector<2x128xf32> to vector<2x32xf32>
    %174 = arith.negf %173 : vector<2x32xf32>
    %175 = math.exp %174 : vector<2x32xf32>
    %cst_42 = arith.constant 1.000000e+00 : f32
    %176 = vector.broadcast %cst_42 : f32 to vector<2x32xf32>
    %177 = arith.addf %176, %175 : vector<2x32xf32>
    %178 = arith.divf %176, %177 : vector<2x32xf32>
    %179 = vector.extract_strided_slice %166 {offsets = [0, 64], sizes = [2, 32], strides = [1, 1]} : vector<2x128xf32> to vector<2x32xf32>
    %180 = math.tanh %179 : vector<2x32xf32>
    %181 = vector.extract_strided_slice %166 {offsets = [0, 96], sizes = [2, 32], strides = [1, 1]} : vector<2x128xf32> to vector<2x32xf32>
    %182 = arith.negf %181 : vector<2x32xf32>
    %183 = math.exp %182 : vector<2x32xf32>
    %cst_43 = arith.constant 1.000000e+00 : f32
    %184 = vector.broadcast %cst_43 : f32 to vector<2x32xf32>
    %185 = arith.addf %184, %183 : vector<2x32xf32>
    %186 = arith.divf %184, %185 : vector<2x32xf32>
    %187 = arith.mulf %178, %158 : vector<2x32xf32>
    %188 = arith.mulf %172, %180 : vector<2x32xf32>
    %189 = arith.addf %187, %188 : vector<2x32xf32>
    %190 = math.tanh %189 : vector<2x32xf32>
    %191 = arith.mulf %186, %190 : vector<2x32xf32>
    %c0_44 = arith.constant 0 : index
    %c5 = arith.constant 5 : index
    %c0_45 = arith.constant 0 : index
    %192 = vector.load %arg9[%c0_44, %c5, %c0_45] : memref<2x8x32xf32, #tpu.memory_space<vmem>>, vector<2x1x32xf32>
    %193 = vector.shape_cast %192 : vector<2x1x32xf32> to vector<2x32xf32>
    %194 = vector.shape_cast %191 : vector<2x32xf32> to vector<2x1x32xf32>
    tpu.vector_store %arg9[%c0_44, %c5, %c0_45], %194 {strides = array<i32>} : memref<2x8x32xf32, #tpu.memory_space<vmem>>, vector<2x1x32xf32>,
    %195 = vector.extract_strided_slice %5 {offsets = [12, 0], sizes = [2, 128], strides = [1, 1]} : vector<16x128xf32> to vector<2x128xf32>
    %cst_46 = arith.constant dense<0.000000e+00> : vector<2x128xf32>
    %196 = tpu.matmul %191, %6, %cst_46 {dimension_numbers = #tpu.dot_dimension_numbers<[1], [0], [0], [1], [0, 0, 1, 1], [], []>} : vector<2x32xf32>, vector<32x128xf32>, vector<2x128xf32> -> vector<2x128xf32>
    %197 = arith.addf %195, %196 : vector<2x128xf32>
    %198 = vector.extract_strided_slice %197 {offsets = [0, 0], sizes = [2, 32], strides = [1, 1]} : vector<2x128xf32> to vector<2x32xf32>
    %199 = arith.negf %198 : vector<2x32xf32>
    %200 = math.exp %199 : vector<2x32xf32>
    %cst_47 = arith.constant 1.000000e+00 : f32
    %201 = vector.broadcast %cst_47 : f32 to vector<2x32xf32>
    %202 = arith.addf %201, %200 : vector<2x32xf32>
    %203 = arith.divf %201, %202 : vector<2x32xf32>
    %204 = vector.extract_strided_slice %197 {offsets = [0, 32], sizes = [2, 32], strides = [1, 1]} : vector<2x128xf32> to vector<2x32xf32>
    %205 = arith.negf %204 : vector<2x32xf32>
    %206 = math.exp %205 : vector<2x32xf32>
    %cst_48 = arith.constant 1.000000e+00 : f32
    %207 = vector.broadcast %cst_48 : f32 to vector<2x32xf32>
    %208 = arith.addf %207, %206 : vector<2x32xf32>
    %209 = arith.divf %207, %208 : vector<2x32xf32>
    %210 = vector.extract_strided_slice %197 {offsets = [0, 64], sizes = [2, 32], strides = [1, 1]} : vector<2x128xf32> to vector<2x32xf32>
    %211 = math.tanh %210 : vector<2x32xf32>
    %212 = vector.extract_strided_slice %197 {offsets = [0, 96], sizes = [2, 32], strides = [1, 1]} : vector<2x128xf32> to vector<2x32xf32>
    %213 = arith.negf %212 : vector<2x32xf32>
    %214 = math.exp %213 : vector<2x32xf32>
    %cst_49 = arith.constant 1.000000e+00 : f32
    %215 = vector.broadcast %cst_49 : f32 to vector<2x32xf32>
    %216 = arith.addf %215, %214 : vector<2x32xf32>
    %217 = arith.divf %215, %216 : vector<2x32xf32>
    %218 = arith.mulf %209, %189 : vector<2x32xf32>
    %219 = arith.mulf %203, %211 : vector<2x32xf32>
    %220 = arith.addf %218, %219 : vector<2x32xf32>
    %221 = math.tanh %220 : vector<2x32xf32>
    %222 = arith.mulf %217, %221 : vector<2x32xf32>
    %c0_50 = arith.constant 0 : index
    %c6 = arith.constant 6 : index
    %c0_51 = arith.constant 0 : index
    %223 = vector.load %arg9[%c0_50, %c6, %c0_51] : memref<2x8x32xf32, #tpu.memory_space<vmem>>, vector<2x1x32xf32>
    %224 = vector.shape_cast %223 : vector<2x1x32xf32> to vector<2x32xf32>
    %225 = vector.shape_cast %222 : vector<2x32xf32> to vector<2x1x32xf32>
    tpu.vector_store %arg9[%c0_50, %c6, %c0_51], %225 {strides = array<i32>} : memref<2x8x32xf32, #tpu.memory_space<vmem>>, vector<2x1x32xf32>,
    %226 = vector.extract_strided_slice %5 {offsets = [14, 0], sizes = [2, 128], strides = [1, 1]} : vector<16x128xf32> to vector<2x128xf32>
    %cst_52 = arith.constant dense<0.000000e+00> : vector<2x128xf32>
    %227 = tpu.matmul %222, %6, %cst_52 {dimension_numbers = #tpu.dot_dimension_numbers<[1], [0], [0], [1], [0, 0, 1, 1], [], []>} : vector<2x32xf32>, vector<32x128xf32>, vector<2x128xf32> -> vector<2x128xf32>
    %228 = arith.addf %226, %227 : vector<2x128xf32>
    %229 = vector.extract_strided_slice %228 {offsets = [0, 0], sizes = [2, 32], strides = [1, 1]} : vector<2x128xf32> to vector<2x32xf32>
    %230 = arith.negf %229 : vector<2x32xf32>
    %231 = math.exp %230 : vector<2x32xf32>
    %cst_53 = arith.constant 1.000000e+00 : f32
    %232 = vector.broadcast %cst_53 : f32 to vector<2x32xf32>
    %233 = arith.addf %232, %231 : vector<2x32xf32>
    %234 = arith.divf %232, %233 : vector<2x32xf32>
    %235 = vector.extract_strided_slice %228 {offsets = [0, 32], sizes = [2, 32], strides = [1, 1]} : vector<2x128xf32> to vector<2x32xf32>
    %236 = arith.negf %235 : vector<2x32xf32>
    %237 = math.exp %236 : vector<2x32xf32>
    %cst_54 = arith.constant 1.000000e+00 : f32
    %238 = vector.broadcast %cst_54 : f32 to vector<2x32xf32>
    %239 = arith.addf %238, %237 : vector<2x32xf32>
    %240 = arith.divf %238, %239 : vector<2x32xf32>
    %241 = vector.extract_strided_slice %228 {offsets = [0, 64], sizes = [2, 32], strides = [1, 1]} : vector<2x128xf32> to vector<2x32xf32>
    %242 = math.tanh %241 : vector<2x32xf32>
    %243 = vector.extract_strided_slice %228 {offsets = [0, 96], sizes = [2, 32], strides = [1, 1]} : vector<2x128xf32> to vector<2x32xf32>
    %244 = arith.negf %243 : vector<2x32xf32>
    %245 = math.exp %244 : vector<2x32xf32>
    %cst_55 = arith.constant 1.000000e+00 : f32
    %246 = vector.broadcast %cst_55 : f32 to vector<2x32xf32>
    %247 = arith.addf %246, %245 : vector<2x32xf32>
    %248 = arith.divf %246, %247 : vector<2x32xf32>
    %249 = arith.mulf %240, %220 : vector<2x32xf32>
    %250 = arith.mulf %234, %242 : vector<2x32xf32>
    %251 = arith.addf %249, %250 : vector<2x32xf32>
    %252 = math.tanh %251 : vector<2x32xf32>
    %253 = arith.mulf %248, %252 : vector<2x32xf32>
    %c0_56 = arith.constant 0 : index
    %c7 = arith.constant 7 : index
    %c0_57 = arith.constant 0 : index
    %254 = vector.load %arg9[%c0_56, %c7, %c0_57] : memref<2x8x32xf32, #tpu.memory_space<vmem>>, vector<2x1x32xf32>
    %255 = vector.shape_cast %254 : vector<2x1x32xf32> to vector<2x32xf32>
    %256 = vector.shape_cast %253 : vector<2x32xf32> to vector<2x1x32xf32>
    tpu.vector_store %arg9[%c0_56, %c7, %c0_57], %256 {strides = array<i32>} : memref<2x8x32xf32, #tpu.memory_space<vmem>>, vector<2x1x32xf32>,
    %c0_58 = arith.constant 0 : index
    %c0_59 = arith.constant 0 : index
    %257 = vector.load %arg7[%c0_58, %c0_59] : memref<2x32xf32, #tpu.memory_space<vmem>>, vector<2x32xf32>
    tpu.vector_store %arg7[%c0_58, %c0_59], %253 {strides = array<i32>} : memref<2x32xf32, #tpu.memory_space<vmem>>, vector<2x32xf32>,
    %c0_60 = arith.constant 0 : index
    %c0_61 = arith.constant 0 : index
    %258 = vector.load %arg8[%c0_60, %c0_61] : memref<2x32xf32, #tpu.memory_space<vmem>>, vector<2x32xf32>
    tpu.vector_store %arg8[%c0_60, %c0_61], %251 {strides = array<i32>} : memref<2x32xf32, #tpu.memory_space<vmem>>, vector<2x32xf32>,
    %c0_62 = arith.constant 0 : index
    %c0_63 = arith.constant 0 : index
    %259 = vector.load %arg4[%c0_62, %c0_63] : memref<32x128xf32, #tpu.memory_space<vmem>>, vector<32x128xf32>
    %c0_64 = arith.constant 0 : index
    %c0_65 = arith.constant 0 : index
    %260 = vector.load %arg5[%c0_64, %c0_65] : memref<1x128xf32, #tpu.memory_space<vmem>>, vector<1x128xf32>
    %c0_66 = arith.constant 0 : index
    %c0_67 = arith.constant 0 : index
    %c0_68 = arith.constant 0 : index
    %261 = vector.load %arg9[%c0_66, %c0_67, %c0_68] : memref<2x8x32xf32, #tpu.memory_space<vmem>>, vector<1x8x32xf32>
    %262 = vector.shape_cast %261 : vector<1x8x32xf32> to vector<8x32xf32>
    %cst_69 = arith.constant dense<0.000000e+00> : vector<8x128xf32>
    %263 = tpu.matmul %262, %259, %cst_69 {dimension_numbers = #tpu.dot_dimension_numbers<[1], [0], [0], [1], [0, 0, 1, 1], [], []>} : vector<8x32xf32>, vector<32x128xf32>, vector<8x128xf32> -> vector<8x128xf32>
    %264 = vector.broadcast %260 : vector<1x128xf32> to vector<8x128xf32>
    %265 = arith.addf %263, %264 : vector<8x128xf32>
    %c0_70 = arith.constant 0 : index
    %c0_71 = arith.constant 0 : index
    %c0_72 = arith.constant 0 : index
    %266 = vector.load %arg6[%c0_70, %c0_71, %c0_72] : memref<2x8x128xf32, #tpu.memory_space<vmem>>, vector<1x8x128xf32>
    %267 = vector.shape_cast %266 : vector<1x8x128xf32> to vector<8x128xf32>
    %268 = vector.shape_cast %265 : vector<8x128xf32> to vector<1x8x128xf32>
    tpu.vector_store %arg6[%c0_70, %c0_71, %c0_72], %268 {strides = array<i32>} : memref<2x8x128xf32, #tpu.memory_space<vmem>>, vector<1x8x128xf32>,
    %c1_73 = arith.constant 1 : index
    %c0_74 = arith.constant 0 : index
    %c0_75 = arith.constant 0 : index
    %269 = vector.load %arg9[%c1_73, %c0_74, %c0_75] : memref<2x8x32xf32, #tpu.memory_space<vmem>>, vector<1x8x32xf32>
    %270 = vector.shape_cast %269 : vector<1x8x32xf32> to vector<8x32xf32>
    %cst_76 = arith.constant dense<0.000000e+00> : vector<8x128xf32>
    %271 = tpu.matmul %270, %259, %cst_76 {dimension_numbers = #tpu.dot_dimension_numbers<[1], [0], [0], [1], [0, 0, 1, 1], [], []>} : vector<8x32xf32>, vector<32x128xf32>, vector<8x128xf32> -> vector<8x128xf32>
    %272 = vector.broadcast %260 : vector<1x128xf32> to vector<8x128xf32>
    %273 = arith.addf %271, %272 : vector<8x128xf32>
    %c1_77 = arith.constant 1 : index
    %c0_78 = arith.constant 0 : index
    %c0_79 = arith.constant 0 : index
    %274 = vector.load %arg6[%c1_77, %c0_78, %c0_79] : memref<2x8x128xf32, #tpu.memory_space<vmem>>, vector<1x8x128xf32>
    %275 = vector.shape_cast %274 : vector<1x8x128xf32> to vector<8x128xf32>
    %276 = vector.shape_cast %273 : vector<8x128xf32> to vector<1x8x128xf32>
    tpu.vector_store %arg6[%c1_77, %c0_78, %c0_79], %276 {strides = array<i32>} : memref<2x8x128xf32, #tpu.memory_space<vmem>>, vector<1x8x128xf32>,
    return
  }
}

</mosaic_0001>

<bundles_post_ra>
// kernel: rnn_model_forward.1
= control target key start
LH: loop header
LB: loop body
LE: loop exit
PB: predicated region body
PF: predicated region fallthrough
CT: control target
= control target key end

     0   :  { %14 = vsyncpa [#allocation4], 0  ;;  %s1260_s0 = inlined_call_operand.vmem [shape: f32[16,32], index: 0, kind: input, shape index: {}]   ;;  %s1261_s1 = inlined_call_operand.vmem [shape: f32[32,128], index: 1, kind: input, shape index: {}]   ;;  %s1262_s2 = inlined_call_operand.vmem [shape: f32[32,128], index: 2, kind: input, shape index: {}]   ;;  %s1263_s3 = inlined_call_operand.vmem [shape: f32[1,128], index: 3, kind: input, shape index: {}]   ;;  %s1264_s4 = inlined_call_operand.vmem [shape: f32[32,128], index: 4, kind: input, shape index: {}]   ;;  %s1265_s5 = inlined_call_operand.vmem [shape: f32[1,128], index: 5, kind: input, shape index: {}]   ;;  %s1266_s6 = inlined_call_operand.hbm [shape: f32[2,8,128], index: 6, kind: output, shape index: {0}]   ;;  %s1267_s7 = inlined_call_operand.hbm [shape: f32[2,32], index: 7, kind: output, shape index: {1}]   ;;  %s1268_s8 = inlined_call_operand.hbm [shape: f32[2,32], index: 8, kind: output, shape index: {2}]  }
   0x1   :  { %v33_v0 = vld [vmem:[%s1261_s1 + $0x18] sm:$0xff]  ;;  %v32_v1 = vld [vmem:[%s1261_s1 + $0x10] sm:$0xff]  ;;  %v31_v4 = vld [vmem:[%s1261_s1 + $0x8] sm:$0xff] }
   0x2   :  { %v71_v2 = vld [vmem:[%s1262_s2 + $0x18] sm:$0xff]  ;;  %57 = vmatpush.msra.mxu0 %v33_v0  ;;  %v70_v3 = vld [vmem:[%s1262_s2 + $0x10] sm:$0xff]  ;;  %v69_v5 = vld [vmem:[%s1262_s2 + $0x8] sm:$0xff] }
   0x3   :  { %87 = vmatpush.msra.mxu1 %v71_v2  ;;  %162 = vmatpush.msra.mxu2 %v71_v2  ;;  %v30_v6 = vld [vmem:[%s1261_s1] sm:$0xff] }
   0x4   :  { %247 = vmatpush.msra.mxu3 %v71_v2  ;;  %58 = vmatpush.msra.mxu0 %v32_v1  ;;  %v68_v7 = vld [vmem:[%s1262_s2] sm:$0xff] }
   0x5   :  { %88 = vmatpush.msra.mxu1 %v70_v3  ;;  %163 = vmatpush.msra.mxu2 %v70_v3 }
   0x6   :  { %248 = vmatpush.msra.mxu3 %v70_v3 }
   0x7   :  { %15 = vsyncpa [#allocation6], 0  ;;  %59 = vmatpush.msra.mxu0 %v31_v4  ;;  %89 = vmatpush.msra.mxu1 %v69_v5  ;;  %v28_v8 = vld [vmem:[%s1260_s0] sm:$0xff]  ;;  %vm38_vm0 = vcmask 261120   ;;  %v1021_v9 = vmov 0.0   ;;  %s1022_s23 = smov 64  }
   0x8   :  { %164 = vmatpush.msra.mxu2 %v69_v5  ;;  %249 = vmatpush.msra.mxu3 %v69_v5  ;;  %v1106_v10 = vld [vmem:[%s1263_s3] ss:$0 sm:$0xff]  ;;  %s1023_s3 = smov 32   ;;  %s822_s15 = sshll.u32 %s1267_s7, 4  ;;  %s823_s15 = int_to_ptr.hbm [resolvable:$true] %s822_s15 }
   0x9   :  { %60 = vmatpush.msra.mxu0 %v30_v6  ;;  %90 = vmatpush.msra.mxu1 %v68_v7  ;;  %s1026_s16 = smov [#allocation7]   ;;  %s833_s20 = sshll.u32 %s1268_s8, 4  ;;  %s834_s20 = int_to_ptr.hbm [resolvable:$true] %s833_s20 }
   0xa   :  { %851 = vmatmul.msk.f32.vlgmr.msra.gmra.mxu0 %vm38_vm0, %v28_v8  ;;  %91 = vmatmul.f32.vlgmr.msra.gmra.mxu1 %v1021_v9  ;;  %s831_s17 = sshll.u32 %s1026_s16, 4  ;;  %s1027_s1 = smov [#allocation3]   ;;  %s832_s17 = int_to_ptr.vmem [resolvable:$true] %s831_s17 }
   0xb   :  { %165 = vmatpush.msra.mxu2 %v68_v7  ;;  %250 = vmatpush.msra.mxu3 %v68_v7  ;;  %s806_s2 = sshll.u32 %s1027_s1, 4  ;;  %s1028_s8 = smov 128   ;;  %s807_s2 = int_to_ptr.vmem [resolvable:$true] %s806_s2 }
   0xc   :  { %332 = vmatpush.msrb.mxu1 %v71_v2  ;;  %579 = vmatpush.msrb.mxu0 %v71_v2  ;;  %s1029_s24 = smov 8  }
   0xd   :  { %417 = vmatpush.msrb.mxu2 %v71_v2  ;;  %494 = vmatpush.msrb.mxu3 %v71_v2 }
   0xe   :  { %333 = vmatpush.msrb.mxu1 %v70_v3  ;;  %580 = vmatpush.msrb.mxu0 %v70_v3 }
   0xf   :  { %418 = vmatpush.msrb.mxu2 %v70_v3  ;;  %495 = vmatpush.msrb.mxu3 %v70_v3 }
  0x10   :  { %334 = vmatpush.msrb.mxu1 %v69_v5  ;;  %581 = vmatpush.msrb.mxu0 %v69_v5 }
  0x11   :  { %419 = vmatpush.msrb.mxu2 %v69_v5  ;;  %496 = vmatpush.msrb.mxu3 %v69_v5 }
  0x12   :  { %335 = vmatpush.msrb.mxu1 %v68_v7  ;;  %582 = vmatpush.msrb.mxu0 %v68_v7 }
  0x13   :  { %420 = vmatpush.msrb.mxu2 %v68_v7  ;;  %497 = vmatpush.msrb.mxu3 %v68_v7 }
  0x14   :  { %664 = vmatpush.msra.mxu1 %v71_v2 }
  0x16   :  { %665 = vmatpush.msra.mxu1 %v70_v3 }
  0x18   :  { %666 = vmatpush.msra.mxu1 %v69_v5 }
  0x1a   :  { %667 = vmatpush.msra.mxu1 %v68_v7 }
  0x87   :  { %v62_v11 = vpop.f32.mrf.mxu0  ;;  %v92_v12 = vpop.f32.mrf.mxu1 }
  0x88   :  { %v1109_v13 = vadd.f32 %v1106_v10, %v62_v11 }
  0x8a   :  { %v95_v14 = vadd.f32 %v92_v12, %v1109_v13 }
  0x8c   :  { %881 = vtanh.f32 %v95_v14  ;;  %v853_v16 = vmul.f32 -1.442695, %v95_v14 }
  0x8e   :  { %883 = vpow2.f32 %v853_v16 }
  0x92   :  { %v882_v15 = vpop.eup %881 }
  0x93   :  { %118 = vrot.lane.b32.xlu0 %v882_v15, %s1022_s23 }
  0x94   :  { %v884_v17 = vpop.eup %883 }
  0x95   :  { %v99_v18 = vadd.f32 1.0, %v884_v17 }
  0x97   :  { %885 = vrcp.f32 %v99_v18  ;;  %v111_v24 = vand.u32 2147483648, %v99_v18  ;;  %vm105_vm2 = vweird.f32 %v99_v18  ;;  %v109_v25 = vand.u32 2147483647, %v99_v18 }
  0x99   :  { %v112_v27 = vor.u32 1.1754944e-38, %v111_v24  ;;  %vm110_vm4 = vcmp.eq.f32.partialorder %v109_v25, 8.507059e+37 }
  0x9d   :  { %v886_v19 = vpop.eup %885 }
  0x9e   :  { %v101_v20 = vmul.f32 %v886_v19, %v99_v18  ;;  %vm106_vm1 = vweird.f32 %v886_v19 }
  0x9f   :  { %vm107_vm3 = vmor %vm105_vm2, %vm106_vm1 }
  0xa0   :  { %v102_v21 = vsub.f32 1.0, %v101_v20 }
  0xa2   :  { %v103_v22 = vmul.f32 %v886_v19, %v102_v21 }
  0xa4   :  { %v104_v23 = vadd.f32 %v886_v19, %v103_v22 }
  0xa6   :  { %v108_v26 = vsel %vm107_vm3, %v886_v19, %v104_v23 }
  0xa7   :  { %v113_v29 = vsel %vm110_vm4, %v112_v27, %v108_v26 }
  0xa8   :  { %v116_v31 = vmul.f32 0.0, %v113_v29 }
 0x105   :  { %v119_v28 = vpop.permute.xlu0 %118 }
 0x106   :  { %v121_v30 = vmul.f32 %v119_v28, %v113_v29 }
 0x108   :  { %123 = vrot.lane.b32.xlu0 %v121_v30, %s1023_s3 }
 0x17a   :  { %v124_v32 = vpop.permute.xlu0 %123 }
 0x17b   :  { %v126_v33 = vadd.f32 %v124_v32, %v116_v31 }
 0x17d   :  { %887 = vtanh.f32 %v126_v33  ;;  %v195_v57 = vrot.slane %v126_v33, 6 }
 0x183   :  { %v888_v34 = vpop.eup %887 }
 0x184   :  { %129 = vrot.lane.b32.xlu1 %v888_v34, %s1022_s23 }
 0x1f6   :  { %v130_v35 = vpop.permute.xlu1 %129 }
 0x1f7   :  { %v1115_v36 = vmul.f32 %v130_v35, %v113_v29 }
 0x1f9   :  { %146 = vrot.lane.b32.xlu1 %v1115_v36, %s1023_s3 }
 0x26b   :  { %v147_v37 = vpop.permute.xlu1 %146 }
 0x26c   :  { %854 = vmatmul.msk.f32.vlgmr.msra.gmra.mxu2 %vm38_vm0, %v147_v37 }
 0x2ef   :  { %v167_v38 = vpop.f32.mrf.mxu2 }
 0x2f0   :  { %v171_v39 = vrot.slane %v167_v38, 6 }
 0x2f2   :  { %v173_v40 = vadd.f32 %v171_v39, %v1109_v13 }
 0x2f4   :  { %889 = vtanh.f32 %v173_v40  ;;  %v855_v42 = vmul.f32 -1.442695, %v173_v40 }
 0x2f6   :  { %891 = vpow2.f32 %v855_v42 }
 0x2fa   :  { %v890_v41 = vpop.eup %889 }
 0x2fb   :  { %199 = vrot.lane.b32.xlu2 %v890_v41, %s1022_s23 }
 0x2fc   :  { %v892_v43 = vpop.eup %891 }
 0x2fd   :  { %v177_v44 = vadd.f32 1.0, %v892_v43 }
 0x2ff   :  { %893 = vrcp.f32 %v177_v44  ;;  %v189_v50 = vand.u32 2147483648, %v177_v44  ;;  %vm183_vm6 = vweird.f32 %v177_v44  ;;  %v187_v51 = vand.u32 2147483647, %v177_v44 }
 0x301   :  { %v190_v53 = vor.u32 1.1754944e-38, %v189_v50  ;;  %vm188_vm8 = vcmp.eq.f32.partialorder %v187_v51, 8.507059e+37 }
 0x305   :  { %v894_v45 = vpop.eup %893 }
 0x306   :  { %v179_v46 = vmul.f32 %v894_v45, %v177_v44  ;;  %vm184_vm5 = vweird.f32 %v894_v45 }
 0x307   :  { %vm185_vm7 = vmor %vm183_vm6, %vm184_vm5 }
 0x308   :  { %v180_v47 = vsub.f32 1.0, %v179_v46 }
 0x30a   :  { %v181_v48 = vmul.f32 %v894_v45, %v180_v47 }
 0x30c   :  { %v182_v49 = vadd.f32 %v894_v45, %v181_v48 }
 0x30e   :  { %v186_v52 = vsel %vm185_vm7, %v894_v45, %v182_v49 }
 0x30f   :  { %v191_v55 = vsel %vm188_vm8, %v190_v53, %v186_v52 }
 0x310   :  { %v197_v58 = vmul.f32 %v195_v57, %v191_v55 }
 0x355   :  { %v200_v54 = vpop.permute.xlu2 %199 }
 0x356   :  { %v202_v56 = vmul.f32 %v200_v54, %v191_v55 }
 0x358   :  { %204 = vrot.lane.b32.xlu2 %v202_v56, %s1023_s3 }
 0x3b2   :  { %v205_v59 = vpop.permute.xlu2 %204 }
 0x3b3   :  { %v207_v60 = vadd.f32 %v205_v59, %v197_v58 }
 0x3b5   :  { %895 = vtanh.f32 %v207_v60  ;;  %v280_v23 = vrot.slane %v207_v60, 6 }
 0x3bb   :  { %v896_v61 = vpop.eup %895 }
 0x3bc   :  { %210 = vrot.lane.b32.xlu0 %v896_v61, %s1022_s23 }
 0x42e   :  { %v211_v62 = vpop.permute.xlu0 %210 }
 0x42f   :  { %v213_v63 = vmul.f32 %v211_v62, %v191_v55 }
 0x431   :  { %215 = vst [vmem:[#allocation1] sm:$0xff] %v213_v63  ;;  %v230_v0 = vrot.slane %v213_v63, 2  ;;  %v29_v63 = vld [vmem:[%s1260_s0 + $0x8] sm:$0xff]  ;;  %s1024_s0 = smov 96  }
 0x432   :  { %852 = vmatmul.msk.f32.gmra.mxu0 %vm38_vm0, %v29_v63 }
 0x433   :  { %231 = vrot.lane.b32.xlu1 %v230_v0, %s1023_s3 }
 0x438   :  { %v1130_v30 = vld [vmem:[#allocation1 + $0x2] ss:$9 sm:$0xff] }
 0x439   :  { %v1132_v31 = vld [vmem:[#allocation1 + $0x3] ss:$9 sm:$0xff] }
 0x4a5   :  { %v232_v1 = vpop.permute.xlu1 %231 }
 0x4a6   :  { %856 = vmatmul.msk.f32.vlgmr.msra.gmra.mxu3 %vm38_vm0, %v232_v1 }
 0x4af   :  { %v65_v1 = vpop.f32.mrf.mxu0 }
 0x529   :  { %v252_v2 = vpop.f32.mrf.mxu3 }
 0x52a   :  { %v256_v3 = vrot.slane %v252_v2, 4  ;;  %v1151_v2 = vadd.f32 %v1106_v10, %v65_v1 }
 0x52c   :  { %v258_v4 = vadd.f32 %v256_v3, %v1109_v13 }
 0x52e   :  { %897 = vtanh.f32 %v258_v4  ;;  %v857_v6 = vmul.f32 -1.442695, %v258_v4 }
 0x530   :  { %899 = vpow2.f32 %v857_v6 }
 0x534   :  { %v898_v5 = vpop.eup %897 }
 0x535   :  { %284 = vrot.lane.b32.xlu2 %v898_v5, %s1022_s23 }
 0x536   :  { %v900_v7 = vpop.eup %899 }
 0x537   :  { %v262_v8 = vadd.f32 1.0, %v900_v7 }
 0x539   :  { %901 = vrcp.f32 %v262_v8  ;;  %v274_v16 = vand.u32 2147483648, %v262_v8  ;;  %vm268_vm10 = vweird.f32 %v262_v8  ;;  %v272_v17 = vand.u32 2147483647, %v262_v8 }
 0x53b   :  { %v275_v19 = vor.u32 1.1754944e-38, %v274_v16  ;;  %vm273_vm12 = vcmp.eq.f32.partialorder %v272_v17, 8.507059e+37 }
 0x53f   :  { %v902_v9 = vpop.eup %901 }
 0x540   :  { %v264_v11 = vmul.f32 %v902_v9, %v262_v8  ;;  %vm269_vm9 = vweird.f32 %v902_v9 }
 0x541   :  { %vm270_vm11 = vmor %vm268_vm10, %vm269_vm9 }
 0x542   :  { %v265_v12 = vsub.f32 1.0, %v264_v11 }
 0x544   :  { %v266_v14 = vmul.f32 %v902_v9, %v265_v12 }
 0x546   :  { %v267_v15 = vadd.f32 %v902_v9, %v266_v14 }
 0x548   :  { %v271_v18 = vsel %vm270_vm11, %v902_v9, %v267_v15 }
 0x549   :  { %v276_v21 = vsel %vm273_vm12, %v275_v19, %v271_v18 }
 0x54a   :  { %v282_v24 = vmul.f32 %v280_v23, %v276_v21 }
 0x58f   :  { %v285_v20 = vpop.permute.xlu2 %284 }
 0x590   :  { %v287_v22 = vmul.f32 %v285_v20, %v276_v21 }
 0x592   :  { %289 = vrot.lane.b32.xlu0 %v287_v22, %s1023_s3 }
 0x604   :  { %v290_v25 = vpop.permute.xlu0 %289 }
 0x605   :  { %v292_v26 = vadd.f32 %v290_v25, %v282_v24 }
 0x607   :  { %903 = vtanh.f32 %v292_v26  ;;  %v365_v53 = vrot.slane %v292_v26, 6 }
 0x60d   :  { %v904_v27 = vpop.eup %903 }
 0x60e   :  { %295 = vrot.lane.b32.xlu1 %v904_v27, %s1022_s23 }
 0x680   :  { %v296_v28 = vpop.permute.xlu1 %295 }
 0x681   :  { %v298_v29 = vmul.f32 %v296_v28, %v276_v21 }
 0x683   :  { %300 = vst [vmem:[#allocation1] sm:$0xff] %v298_v29  ;;  %v315_v32 = vrot.slane %v298_v29, 4 }
 0x685   :  { %316 = vrot.lane.b32.xlu2 %v315_v32, %s1023_s3 }
 0x68a   :  { %v1140_v60 = vld [vmem:[#allocation1 + $0x4] ss:$9 sm:$0xff] }
 0x68b   :  { %v1142_v61 = vld [vmem:[#allocation1 + $0x5] ss:$9 sm:$0xff] }
 0x6df   :  { %v317_v33 = vpop.permute.xlu2 %316 }
 0x6e0   :  { %858 = vmatmul.msk.f32.vlgmr.msrb.gmra.mxu1 %vm38_vm0, %v317_v33 }
 0x75d   :  { %v337_v34 = vpop.f32.mrf.mxu1 }
 0x75e   :  { %v341_v35 = vrot.slane %v337_v34, 2 }
 0x760   :  { %v343_v37 = vadd.f32 %v341_v35, %v1109_v13 }
 0x762   :  { %905 = vtanh.f32 %v343_v37  ;;  %v859_v39 = vmul.f32 -1.442695, %v343_v37 }
 0x764   :  { %907 = vpow2.f32 %v859_v39 }
 0x768   :  { %v906_v38 = vpop.eup %905 }
 0x769   :  { %369 = vrot.lane.b32.xlu0 %v906_v38, %s1022_s23 }
 0x76a   :  { %v908_v40 = vpop.eup %907 }
 0x76b   :  { %v347_v41 = vadd.f32 1.0, %v908_v40 }
 0x76d   :  { %909 = vrcp.f32 %v347_v41  ;;  %v359_v47 = vand.u32 2147483648, %v347_v41  ;;  %vm353_vm14 = vweird.f32 %v347_v41  ;;  %v357_v48 = vand.u32 2147483647, %v347_v41 }
 0x76f   :  { %v360_v49 = vor.u32 1.1754944e-38, %v359_v47  ;;  %vm358_vm1 = vcmp.eq.f32.partialorder %v357_v48, 8.507059e+37 }
 0x773   :  { %v910_v42 = vpop.eup %909 }
 0x774   :  { %v349_v43 = vmul.f32 %v910_v42, %v347_v41  ;;  %vm354_vm13 = vweird.f32 %v910_v42 }
 0x775   :  { %vm355_vm15 = vmor %vm353_vm14, %vm354_vm13 }
 0x776   :  { %v350_v44 = vsub.f32 1.0, %v349_v43 }
 0x778   :  { %v351_v45 = vmul.f32 %v910_v42, %v350_v44 }
 0x77a   :  { %v352_v46 = vadd.f32 %v910_v42, %v351_v45 }
 0x77c   :  { %v356_v13 = vsel %vm355_vm15, %v910_v42, %v352_v46 }
 0x77d   :  { %v361_v51 = vsel %vm358_vm1, %v360_v49, %v356_v13 }
 0x77e   :  { %v367_v54 = vmul.f32 %v365_v53, %v361_v51 }
 0x7db   :  { %v370_v50 = vpop.permute.xlu0 %369 }
 0x7dc   :  { %v372_v52 = vmul.f32 %v370_v50, %v361_v51 }
 0x7de   :  { %374 = vrot.lane.b32.xlu1 %v372_v52, %s1023_s3 }
 0x850   :  { %v375_v55 = vpop.permute.xlu1 %374 }
 0x851   :  { %v377_v56 = vadd.f32 %v375_v55, %v367_v54 }
 0x853   :  { %911 = vtanh.f32 %v377_v56  ;;  %v447_v22 = vrot.slane %v377_v56, 6 }
 0x859   :  { %v912_v57 = vpop.eup %911 }
 0x85a   :  { %380 = vrot.lane.b32.xlu2 %v912_v57, %s1022_s23 }
 0x8b4   :  { %v381_v58 = vpop.permute.xlu2 %380 }
 0x8b5   :  { %v383_v59 = vmul.f32 %v381_v58, %v361_v51 }
 0x8b7   :  { %385 = vst [vmem:[#allocation1] sm:$0xff] %v383_v59  ;;  %v400_v62 = vrot.slane %v383_v59, 6 }
 0x8b9   :  { %401 = vrot.lane.b32.xlu0 %v400_v62, %s1023_s3 }
 0x8be   :  { %v387_v58 = vld [vmem:[#allocation1 + $0x6] ss:$9 sm:$0xff] }
 0x8bf   :  { %v1166_v59 = vld [vmem:[#allocation1 + $0x7] ss:$9 sm:$0xff] }
 0x92b   :  { %v402_v0 = vpop.permute.xlu0 %401 }
 0x92c   :  { %860 = vmatmul.msk.f32.vlgmr.msrb.gmra.mxu2 %vm38_vm0, %v402_v0 }
 0x9af   :  { %v422_v3 = vpop.f32.mrf.mxu2 }
 0x9b0   :  { %v425_v4 = vadd.f32 %v422_v3, %v1151_v2 }
 0x9b2   :  { %913 = vtanh.f32 %v425_v4  ;;  %v861_v6 = vmul.f32 -1.442695, %v425_v4 }
 0x9b4   :  { %915 = vpow2.f32 %v861_v6 }
 0x9b8   :  { %v914_v5 = vpop.eup %913 }
 0x9b9   :  { %451 = vrot.lane.b32.xlu1 %v914_v5, %s1022_s23 }
 0x9ba   :  { %v916_v7 = vpop.eup %915 }
 0x9bb   :  { %v429_v8 = vadd.f32 1.0, %v916_v7 }
 0x9bd   :  { %917 = vrcp.f32 %v429_v8  ;;  %v441_v10 = vand.u32 2147483648, %v429_v8  ;;  %vm435_vm3 = vweird.f32 %v429_v8  ;;  %v439_v16 = vand.u32 2147483647, %v429_v8 }
 0x9bf   :  { %v442_v18 = vor.u32 1.1754944e-38, %v441_v10  ;;  %vm440_vm5 = vcmp.eq.f32.partialorder %v439_v16, 8.507059e+37 }
 0x9c3   :  { %v918_v9 = vpop.eup %917 }
 0x9c4   :  { %v431_v11 = vmul.f32 %v918_v9, %v429_v8  ;;  %vm436_vm2 = vweird.f32 %v918_v9 }
 0x9c5   :  { %vm437_vm4 = vmor %vm435_vm3, %vm436_vm2  ;;  %vm143_vm3 = vcmask 253952  }
 0x9c6   :  { %v432_v12 = vsub.f32 1.0, %v431_v11 }
 0x9c8   :  { %v433_v14 = vmul.f32 %v918_v9, %v432_v12 }
 0x9ca   :  { %v434_v15 = vadd.f32 %v918_v9, %v433_v14 }
 0x9cc   :  { %v438_v17 = vsel %vm437_vm4, %v918_v9, %v434_v15  ;;  %vm735_vm4 = vcmask 261126  }
 0x9cd   :  { %v443_v20 = vsel %vm440_vm5, %v442_v18, %v438_v17 }
 0x9ce   :  { %v449_v23 = vmul.f32 %v447_v22, %v443_v20 }
 0xa2b   :  { %v452_v19 = vpop.permute.xlu1 %451 }
 0xa2c   :  { %v454_v21 = vmul.f32 %v452_v19, %v443_v20 }
 0xa2e   :  { %456 = vrot.lane.b32.xlu2 %v454_v21, %s1023_s3 }
 0xa88   :  { %v457_v24 = vpop.permute.xlu2 %456 }
 0xa89   :  { %v459_v25 = vadd.f32 %v457_v24, %v449_v23 }
 0xa8b   :  { %919 = vtanh.f32 %v459_v25  ;;  %v527_v51 = vrot.slane %v459_v25, 6 }
 0xa91   :  { %v920_v26 = vpop.eup %919 }
 0xa92   :  { %462 = vrot.lane.b32.xlu0 %v920_v26, %s1022_s23 }
 0xb04   :  { %v463_v27 = vpop.permute.xlu0 %462 }
 0xb05   :  { %v1157_v28 = vmul.f32 %v463_v27, %v443_v20 }
 0xb07   :  { %478 = vrot.lane.b32.xlu1 %v1157_v28, %s1023_s3 }
 0xb79   :  { %v479_v29 = vpop.permute.xlu1 %478 }
 0xb7a   :  { %862 = vmatmul.msk.f32.vlgmr.msrb.gmra.mxu3 %vm38_vm0, %v479_v29 }
 0xbfd   :  { %v499_v32 = vpop.f32.mrf.mxu3 }
 0xbfe   :  { %v503_v33 = vrot.slane %v499_v32, 6 }
 0xc00   :  { %v505_v34 = vadd.f32 %v503_v33, %v1151_v2 }
 0xc02   :  { %921 = vtanh.f32 %v505_v34  ;;  %v863_v37 = vmul.f32 -1.442695, %v505_v34 }
 0xc04   :  { %923 = vpow2.f32 %v863_v37 }
 0xc08   :  { %v922_v35 = vpop.eup %921 }
 0xc09   :  { %531 = vrot.lane.b32.xlu2 %v922_v35, %s1022_s23 }
 0xc0a   :  { %v924_v38 = vpop.eup %923 }
 0xc0b   :  { %v509_v39 = vadd.f32 1.0, %v924_v38 }
 0xc0d   :  { %925 = vrcp.f32 %v509_v39  ;;  %v521_v45 = vand.u32 2147483648, %v509_v39  ;;  %vm515_vm7 = vweird.f32 %v509_v39  ;;  %v519_v46 = vand.u32 2147483647, %v509_v39 }
 0xc0f   :  { %v522_v48 = vor.u32 1.1754944e-38, %v521_v45  ;;  %vm520_vm9 = vcmp.eq.f32.partialorder %v519_v46, 8.507059e+37 }
 0xc13   :  { %v926_v40 = vpop.eup %925 }
 0xc14   :  { %v511_v41 = vmul.f32 %v926_v40, %v509_v39  ;;  %vm516_vm6 = vweird.f32 %v926_v40 }
 0xc15   :  { %vm517_vm8 = vmor %vm515_vm7, %vm516_vm6 }
 0xc16   :  { %v512_v42 = vsub.f32 1.0, %v511_v41  ;;  %v221_v41 = vperm.slane %v1132_v31, 0 }
 0xc18   :  { %v513_v43 = vmul.f32 %v926_v40, %v512_v42  ;;  %v390_v42 = vperm.slane %v387_v58, 0 }
 0xc1a   :  { %v514_v44 = vadd.f32 %v926_v40, %v513_v43  ;;  %v467_v43 = vrot.slane %v1157_v28, 1 }
 0xc1c   :  { %v518_v47 = vsel %vm517_vm8, %v926_v40, %v514_v44  ;;  %v135_v40 = vperm.slane %v1115_v36, 0  ;;  %v469_v44 = vperm.slane %v467_v43, 0 }
 0xc1d   :  { %v523_v49 = vsel %vm520_vm9, %v522_v48, %v518_v47 }
 0xc1e   :  { %v529_v52 = vmul.f32 %v527_v51, %v523_v49 }
 0xc63   :  { %v532_v13 = vpop.permute.xlu2 %531 }
 0xc64   :  { %v534_v50 = vmul.f32 %v532_v13, %v523_v49 }
 0xc66   :  { %536 = vrot.lane.b32.xlu0 %v534_v50, %s1023_s3 }
 0xcd8   :  { %v537_v53 = vpop.permute.xlu0 %536 }
 0xcd9   :  { %v539_v54 = vadd.f32 %v537_v53, %v529_v52 }
 0xcdb   :  { %927 = vtanh.f32 %v539_v54  ;;  %v612_v21 = vrot.slane %v539_v54, 6 }
 0xce1   :  { %v928_v55 = vpop.eup %927 }
 0xce2   :  { %542 = vrot.lane.b32.xlu1 %v928_v55, %s1022_s23 }
 0xd54   :  { %v543_v56 = vpop.permute.xlu1 %542 }
 0xd55   :  { %v545_v57 = vmul.f32 %v543_v56, %v523_v49 }
 0xd57   :  { %v562_v62 = vrot.slane %v545_v57, 2  ;;  %547 = vst [vmem:[#allocation1] sm:$0xff] %v545_v57 }
 0xd59   :  { %563 = vrot.lane.b32.xlu2 %v562_v62, %s1023_s3  ;;  %v134_v62 = vrot.slane %v1115_v36, 1 }
 0xd5e   :  { %v1177_v29 = vld [vmem:[#allocation1 + $0x2] ss:$9 sm:$0xff] }
 0xd5f   :  { %v1179_v32 = vld [vmem:[#allocation1 + $0x3] ss:$9 sm:$0xff] }
 0xdb3   :  { %v564_v63 = vpop.permute.xlu2 %563 }
 0xdb4   :  { %864 = vmatmul.msk.f32.vlgmr.msrb.gmra.mxu0 %vm38_vm0, %v564_v63 }
 0xe31   :  { %v584_v0 = vpop.f32.mrf.mxu0 }
 0xe32   :  { %v588_v1 = vrot.slane %v584_v0, 4  ;;  %v136_v0 = vperm.slane %v134_v62, 0 }
 0xe34   :  { %v590_v3 = vadd.f32 %v588_v1, %v1151_v2 }
 0xe36   :  { %929 = vtanh.f32 %v590_v3  ;;  %v865_v5 = vmul.f32 -1.442695, %v590_v3  ;;  %v305_v3 = vperm.slane %v1140_v60, 0 }
 0xe38   :  { %931 = vpow2.f32 %v865_v5  ;;  %v391_v5 = vperm.slane %v1166_v59, 0 }
 0xe3c   :  { %v930_v4 = vpop.eup %929 }
 0xe3d   :  { %616 = vrot.lane.b32.xlu0 %v930_v4, %s1022_s23 }
 0xe3e   :  { %v932_v6 = vpop.eup %931 }
 0xe3f   :  { %v594_v7 = vadd.f32 1.0, %v932_v6  ;;  %v552_v6 = vperm.slane %v1177_v29, 0 }
 0xe41   :  { %933 = vrcp.f32 %v594_v7  ;;  %v606_v15 = vand.u32 2147483648, %v594_v7  ;;  %vm600_vm11 = vweird.f32 %v594_v7  ;;  %v604_v10 = vand.u32 2147483647, %v594_v7 }
 0xe43   :  { %v607_v17 = vor.u32 1.1754944e-38, %v606_v15  ;;  %vm605_vm13 = vcmp.eq.f32.partialorder %v604_v10, 8.507059e+37 }
 0xe47   :  { %v934_v8 = vpop.eup %933 }
 0xe48   :  { %v596_v9 = vmul.f32 %v934_v8, %v594_v7  ;;  %vm601_vm10 = vweird.f32 %v934_v8 }
 0xe49   :  { %vm602_vm12 = vmor %vm600_vm11, %vm601_vm10 }
 0xe4a   :  { %v597_v11 = vsub.f32 1.0, %v596_v9 }
 0xe4c   :  { %v598_v12 = vmul.f32 %v934_v8, %v597_v11 }
 0xe4e   :  { %v599_v14 = vadd.f32 %v934_v8, %v598_v12 }
 0xe50   :  { %v603_v16 = vsel %vm602_vm12, %v934_v8, %v599_v14 }
 0xe51   :  { %v608_v19 = vsel %vm605_vm13, %v607_v17, %v603_v16  ;;  %v220_v16 = vperm.slane %v1130_v30, 0  ;;  %v553_v30 = vperm.slane %v1179_v32, 0 }
 0xe52   :  { %v614_v22 = vmul.f32 %v612_v21, %v608_v19 }
 0xeaf   :  { %v617_v18 = vpop.permute.xlu0 %616 }
 0xeb0   :  { %v619_v20 = vmul.f32 %v617_v18, %v608_v19  ;;  %v306_v18 = vperm.slane %v1142_v61, 0 }
 0xeb2   :  { %621 = vrot.lane.b32.xlu1 %v619_v20, %s1023_s3  ;;  %v468_v20 = vperm.slane %v1157_v28, 0 }
 0xf24   :  { %v622_v23 = vpop.permute.xlu1 %621 }
 0xf25   :  { %v1173_v24 = vadd.f32 %v622_v23, %v614_v22 }
 0xf27   :  { %935 = vtanh.f32 %v1173_v24  ;;  %v697_v9 = vrot.slane %v1173_v24, 6 }
 0xf2d   :  { %v936_v25 = vpop.eup %935 }
 0xf2e   :  { %627 = vrot.lane.b32.xlu2 %v936_v25, %s1022_s23 }
 0xf88   :  { %v628_v26 = vpop.permute.xlu2 %627 }
 0xf89   :  { %v630_v27 = vmul.f32 %v628_v26, %v608_v19 }
 0xf8b   :  { %v647_v33 = vrot.slane %v630_v27, 4  ;;  %632 = vst [vmem:[#allocation1] sm:$0xff] %v630_v27 }
 0xf8d   :  { %648 = vrot.lane.b32.xlu0 %v647_v33, %s1023_s3 }
 0xf92   :  { %v636_v7 = vld [vmem:[#allocation1 + $0x5] ss:$9 sm:$0xff] }
 0xf93   :  { %v638_v60 = vperm.slane %v636_v7, 0 }
 0xfff   :  { %v649_v34 = vpop.permute.xlu0 %648 }
0x1000   :  { %866 = vmatmul.msk.f32.vlgmr.msra.gmra.mxu1 %vm38_vm0, %v649_v34  ;;  %v745_v34 = vld [vmem:[%s1264_s4 + $0x18] sm:$0xff] }
0x1001   :  { %766 = vmatpush.msra.mxu2 %v745_v34  ;;  %792 = vmatpush.msra.mxu3 %v745_v34 }
0x107d   :  { %v669_v35 = vpop.f32.mrf.mxu1 }
0x107e   :  { %v673_v37 = vrot.slane %v669_v35, 2  ;;  %v744_v35 = vld [vmem:[%s1264_s4 + $0x10] sm:$0xff] }
0x107f   :  { %767 = vmatpush.msra.mxu2 %v744_v35  ;;  %793 = vmatpush.msra.mxu3 %v744_v35 }
0x1080   :  { %v675_v38 = vadd.f32 %v673_v37, %v1151_v2  ;;  %v634_v2 = vld [vmem:[#allocation1 + $0x4] ss:$9 sm:$0xff] }
0x1081   :  { %v637_v45 = vperm.slane %v634_v2, 0  ;;  %v743_v37 = vld [vmem:[%s1264_s4 + $0x8] sm:$0xff] }
0x1082   :  { %937 = vtanh.f32 %v675_v38  ;;  %v867_v46 = vmul.f32 -1.442695, %v675_v38  ;;  %v742_v38 = vld [vmem:[%s1264_s4] sm:$0xff]  ;;  %768 = vmatpush.msra.mxu2 %v743_v37  ;;  %794 = vmatpush.msra.mxu3 %v743_v37  ;;  %s1025_s4 = smov [#allocation5]  }
0x1083   :  { %s820_s12 = sshll.u32 %s1025_s4, 4  ;;  %s821_s12 = int_to_ptr.vmem [resolvable:$true] %s820_s12 }
0x1084   :  { %939 = vpow2.f32 %v867_v46  ;;  %769 = vmatpush.msra.mxu2 %v742_v38  ;;  %795 = vmatpush.msra.mxu3 %v742_v38 }
0x1088   :  { %v938_v39 = vpop.eup %937 }
0x1089   :  { %701 = vrot.lane.b32.xlu1 %v938_v39, %s1022_s23 }
0x108a   :  { %v940_v47 = vpop.eup %939 }
0x108b   :  { %v679_v48 = vadd.f32 1.0, %v940_v47 }
0x108d   :  { %941 = vrcp.f32 %v679_v48  ;;  %v691_v52 = vand.u32 2147483648, %v679_v48  ;;  %vm685_vm15 = vweird.f32 %v679_v48  ;;  %v689_v53 = vand.u32 2147483647, %v679_v48 }
0x108f   :  { %v692_v55 = vor.u32 1.1754944e-38, %v691_v52  ;;  %vm690_vm2 = vcmp.eq.f32.partialorder %v689_v53, 8.507059e+37 }
0x1091   :  { %137 = vrot.lane.b32.xlu1 %v135_v40, %s1023_s3 }
0x1093   :  { %v942_v31 = vpop.eup %941 }
0x1094   :  { %v681_v13 = vmul.f32 %v942_v31, %v679_v48  ;;  %vm686_vm14 = vweird.f32 %v942_v31 }
0x1095   :  { %vm687_vm1 = vmor %vm685_vm15, %vm686_vm14 }
0x1096   :  { %v682_v49 = vsub.f32 1.0, %v681_v13 }
0x1098   :  { %v683_v50 = vmul.f32 %v942_v31, %v682_v49 }
0x1099   :  { %224 = vrot.lane.b32.xlu1 %v221_v41, %s1023_s3 }
0x109a   :  { %v684_v51 = vadd.f32 %v942_v31, %v683_v50 }
0x109c   :  { %v688_v54 = vsel %vm687_vm1, %v942_v31, %v684_v51 }
0x109d   :  { %v693_v57 = vsel %vm690_vm2, %v692_v55, %v688_v54 }
0x109e   :  { %v699_v11 = vmul.f32 %v697_v9, %v693_v57 }
0x10a1   :  { %392 = vrot.lane.b32.xlu1 %v390_v42, %s1023_s3 }
0x10a9   :  { %472 = vrot.lane.b32.xlu1 %v469_v44, %s1023_s3  ;;  %v880_v44 = vld [vmem:[%s1265_s5] ss:$0 sm:$0xff] }
0x10b1   :  { %639 = vrot.lane.b32.xlu1 %v637_v45, %s1023_s3 }
0x10fb   :  { %v702_v56 = vpop.permute.xlu1 %701 }
0x10fc   :  { %v704_v58 = vmul.f32 %v702_v56, %v693_v57 }
0x10fe   :  { %706 = vrot.lane.b32.xlu2 %v704_v58, %s1023_s3 }
0x1103   :  { %v138_v63 = vpop.permute.xlu1 %137 }
0x1104   :  { %144 = vst.msk [vmem:[#allocation2] sm:$0x1] %vm143_vm3, %v138_v63 }
0x1106   :  { %139 = vrot.lane.b32.xlu2 %v136_v0, %s1023_s3 }
0x110b   :  { %v225_v1 = vpop.permute.xlu1 %224 }
0x110c   :  { %229 = vst.msk [vmem:[#allocation2 + $0x9] sm:$0x1] %vm143_vm3, %v225_v1 }
0x110e   :  { %307 = vrot.lane.b32.xlu2 %v305_v3, %s1023_s3 }
0x1113   :  { %v393_v4 = vpop.permute.xlu1 %392 }
0x1114   :  { %398 = vst.msk [vmem:[#allocation2 + $0x3] sm:$0x1] %vm143_vm3, %v393_v4 }
0x1116   :  { %394 = vrot.lane.b32.xlu2 %v391_v5, %s1023_s3 }
0x111b   :  { %v473_v36 = vpop.permute.xlu1 %472 }
0x111c   :  { %477 = vst.msk [vmem:[#allocation2 + $0xc] sm:$0x1] %vm143_vm3, %v473_v36 }
0x111e   :  { %554 = vrot.lane.b32.xlu2 %v552_v6, %s1023_s3 }
0x1123   :  { %v640_v8 = vpop.permute.xlu1 %639 }
0x1124   :  { %645 = vst.msk [vmem:[#allocation2 + $0x6] sm:$0x1] %vm143_vm3, %v640_v8 }
0x1126   :  { %641 = vrot.lane.b32.xlu2 %v638_v60, %s1023_s3 }
0x1158   :  { %v707_v59 = vpop.permute.xlu2 %706 }
0x1159   :  { %v709_v12 = vadd.f32 %v707_v59, %v699_v11 }
0x115b   :  { %943 = vtanh.f32 %v709_v12 }
0x1160   :  { %v140_v14 = vpop.permute.xlu2 %139 }
0x1161   :  { %v944_v15 = vpop.eup %943  ;;  %145 = vst.msk [vmem:[#allocation2 + $0x8] sm:$0x1] %vm143_vm3, %v140_v14 }
0x1162   :  { %712 = vrot.lane.b32.xlu0 %v944_v15, %s1022_s23 }
0x1168   :  { %v308_v10 = vpop.permute.xlu2 %307 }
0x1169   :  { %313 = vst.msk [vmem:[#allocation2 + $0x2] sm:$0x1] %vm143_vm3, %v308_v10 }
0x116a   :  { %222 = vrot.lane.b32.xlu0 %v220_v16, %s1023_s3 }
0x1170   :  { %v395_v17 = vpop.permute.xlu2 %394 }
0x1171   :  { %399 = vst.msk [vmem:[#allocation2 + $0xb] sm:$0x1] %vm143_vm3, %v395_v17 }
0x1172   :  { %309 = vrot.lane.b32.xlu0 %v306_v18, %s1023_s3 }
0x1178   :  { %v555_v19 = vpop.permute.xlu2 %554 }
0x1179   :  { %560 = vst.msk [vmem:[#allocation2 + $0x5] sm:$0x1] %vm143_vm3, %v555_v19 }
0x117a   :  { %470 = vrot.lane.b32.xlu0 %v468_v20, %s1023_s3 }
0x1180   :  { %v642_v21 = vpop.permute.xlu2 %641 }
0x1181   :  { %646 = vst.msk [vmem:[#allocation2 + $0xe] sm:$0x1] %vm143_vm3, %v642_v21 }
0x1182   :  { %556 = vrot.lane.b32.xlu0 %v553_v30, %s1023_s3 }
0x11d4   :  { %v713_v22 = vpop.permute.xlu0 %712 }
0x11d5   :  { %v715_v61 = vmul.f32 %v713_v22, %v693_v57 }
0x11d7   :  { %717 = vst [vmem:[#allocation1] sm:$0xff] %v715_v61  ;;  %732 = vrot.lane.b32.xlu2 %v715_v61, %s1023_s3 }
0x11dc   :  { %v223_v23 = vpop.permute.xlu0 %222 }
0x11dd   :  { %228 = vst.msk [vmem:[#allocation2 + $0x1] sm:$0x1] %vm143_vm3, %v223_v23 }
0x11de   :  { %v719_v28 = vld [vmem:[#allocation1 + $0x6] ss:$9 sm:$0xff] }
0x11df   :  { %v721_v24 = vld [vmem:[#allocation1 + $0x7] ss:$9 sm:$0xff]  ;;  %v722_v25 = vperm.slane %v719_v28, 0 }
0x11e0   :  { %v723_v26 = vperm.slane %v721_v24, 0 }
0x11e1   :  { %724 = vrot.lane.b32.xlu0 %v722_v25, %s1023_s3 }
0x11e2   :  { %726 = vrot.lane.b32.xlu1 %v723_v26, %s1023_s3  ;;  %s808_s3 = sshll.u32 %s1266_s6, 4  ;;  %s809_s3 = int_to_ptr.hbm [resolvable:$true] %s808_s3 }
0x11e4   :  { %v310_v27 = vpop.permute.xlu0 %309 }
0x11e5   :  { %314 = vst.msk [vmem:[#allocation2 + $0xa] sm:$0x1] %vm143_vm3, %v310_v27 }
0x11e9   :  { %738 = vrot.lane.b32.xlu0 %v709_v12, %s1024_s0 }
0x11ec   :  { %v471_v29 = vpop.permute.xlu0 %470 }
0x11ed   :  { %476 = vst.msk [vmem:[#allocation2 + $0x4] sm:$0x1] %vm143_vm3, %v471_v29 }
0x11f4   :  { %v557_v32 = vpop.permute.xlu0 %556 }
0x11f5   :  { %561 = vst.msk [vmem:[#allocation2 + $0xd] sm:$0x1] %vm143_vm3, %v557_v32 }
0x1231   :  { %v733_v33 = vpop.permute.xlu2 %732 }
0x1232   :  { %736 = vst.msk [vmem:[#allocation5 - $0x6] sm:$0xc0] %vm735_vm4, %v733_v33 }
0x1233   :  { %825 = dma.vmem_to_hbm [thread:$0]  %s821_s12, 32, %s823_s15, [#allocation6]  }
0x1253   :  { %v725_v39 = vpop.permute.xlu0 %724 }
0x1254   :  { %v727_v40 = vpop.permute.xlu1 %726  ;;  %730 = vst.msk [vmem:[#allocation2 + $0x7] sm:$0x1] %vm143_vm3, %v725_v39 }
0x1255   :  { %731 = vst.msk [vmem:[#allocation2 + $0xf] sm:$0x1] %vm143_vm3, %v727_v40 }
0x125b   :  { %v739_v41 = vpop.permute.xlu0 %738  ;;  %v747_v42 = vld [vmem:[#allocation2] sm:$0xff] }
0x125c   :  { %741 = vst.msk [vmem:[#allocation7 - $0x6] sm:$0xc0] %vm735_vm4, %v739_v41  ;;  %868 = vmatmul.msk.f32.vlgmr.msra.gmra.mxu2 %vm38_vm0, %v747_v42  ;;  %v776_v43 = vld [vmem:[#allocation2 + $0x8] sm:$0xff] }
0x125d   :  { %869 = vmatmul.msk.f32.vlgmr.msra.gmra.mxu3 %vm38_vm0, %v776_v43  ;;  %836 = dma.vmem_to_hbm [thread:$0]  %s832_s17, 32, %s834_s20, [#allocation6]  }
0x12df   :  { %v771_v2 = vpop.f32.mrf.mxu2 }
0x12e0   :  { %v772_v45 = vadd.f32 %v880_v44, %v771_v2  ;;  %v797_v46 = vpop.f32.mrf.mxu3 }
0x12e1   :  { %v798_v47 = vadd.f32 %v880_v44, %v797_v46 }
0x12e2   :  { %774 = vst [vmem:[#allocation3] sm:$0xff] %v772_v45 }
0x12e3   :  { %801 = vst [vmem:[#allocation3 + $0x8] sm:$0xff] %v798_v47 }
0x12e4   :  { %814 = dma.vmem_to_hbm [thread:$0]  %s807_s2, 256, %s809_s3, [#allocation4], %s1028_s8, %s1028_s8, %s1029_s24  }
0x12e5   :  { %1017 = dma.done.wait [#allocation4], 256  }
0x12e6   :  { %1018 = vsyncadd [#allocation4], 4294967040 }
0x12e7   :  { %1019 = dma.done.wait [#allocation6], 64  }
0x12e8   :  { %1020 = vsyncadd [#allocation6], 4294967232 }
0x12e9   :  { %849 = vsyncpa [#allocation4], 1 }
0x12ea   :  { %850 = vsyncpa [#allocation6], 1 }

</bundles_post_ra>
